<compile_context>
chip_gen: v6e
topology: v6e:2x2x1
jax: 0.10.0
libtpu: 0.0.40
codegen_flags: <defaults>
</compile_context>

<pallas_src>
import jax
import jax.numpy as jnp
from jax.experimental import pallas as pl
from jax.experimental.pallas import tpu as pltpu

INPUT_DIM = 15
HIDDEN_DIM = 64
OUTPUT_DIM = 1


def _round_up(n, m):
    return ((n + m - 1) // m) * m


def polymer_mlp_kernel(x_ref, w1_ref, b1_ref, w2_ref, b2_ref, w3_ref, b3_ref, o_ref):
    # x_ref: (INPUT_DIM, TILE_B) bf16 -- batch on lanes (lane-dense).
    # w*_ref: (out_features, in_features) bf16, VMEM-resident across all tiles.
    # b*_ref: (out_features, 1) f32.
    # Layer 1: (64,15) @ (15,TB) -> (64,TB), f32 accumulate on the MXU.
    h = jnp.dot(w1_ref[...], x_ref[...], preferred_element_type=jnp.float32)
    h = jnp.maximum(h + b1_ref[...], 0.0)  # f32 bias + ReLU on the VPU
    # Layer 2: (64,64) @ (64,TB) -> (64,TB).
    h = jnp.dot(w2_ref[...], h.astype(jnp.bfloat16),
                preferred_element_type=jnp.float32)
    h = jnp.maximum(h + b2_ref[...], 0.0)
    # Layer 3 (output head): thin (1,64) LHS in the transposed layout -> (1,TB).
    out = jnp.dot(w3_ref[...], h.astype(jnp.bfloat16),
                  preferred_element_type=jnp.float32)
    # Lane-dense (1, TILE_B) store.
    o_ref[...] = (out + b3_ref[...]).astype(o_ref.dtype)


def polymer_nn_forward(x, params, tile_b=1024):
    """x: (B, INPUT_DIM) float32 -> (B, OUTPUT_DIM) float32."""
    w1, b1, w2, b2, w3, b3 = params  # weights (in, out) f32, biases (1, out) f32
    B = x.shape[0]

    # Tile size: multiple of 128 lanes, capped at tile_b rows of batch per step.
    tile_b = min(tile_b, _round_up(B, 128))
    b_pad = _round_up(B, tile_b)
    num_tiles = b_pad // tile_b

    # Transposed, bf16, zero-padded input: (INPUT_DIM, B_pad), batch on lanes.
    xt = jnp.zeros((INPUT_DIM, b_pad), jnp.bfloat16)
    xt = xt.at[:, :B].set(x.T.astype(jnp.bfloat16))

    # Weights in (out, in) layout, bf16 for the MXU; biases (out, 1) f32.
    w1t = w1.T.astype(jnp.bfloat16)
    w2t = w2.T.astype(jnp.bfloat16)
    w3t = w3.T.astype(jnp.bfloat16)
    b1c = b1.reshape(HIDDEN_DIM, 1).astype(jnp.float32)
    b2c = b2.reshape(HIDDEN_DIM, 1).astype(jnp.float32)
    b3c = b3.reshape(OUTPUT_DIM, 1).astype(jnp.float32)

    def const(shape):
        return pl.BlockSpec(shape, lambda i: tuple(0 for _ in shape))

    flops = 2 * b_pad * (INPUT_DIM * HIDDEN_DIM
                         + HIDDEN_DIM * HIDDEN_DIM
                         + HIDDEN_DIM * OUTPUT_DIM)
    bytes_accessed = (xt.size * 2 + b_pad * OUTPUT_DIM * 4
                      + (w1t.size + w2t.size + w3t.size) * 2
                      + (b1c.size + b2c.size + b3c.size) * 4)

    out_t = pl.pallas_call(
        polymer_mlp_kernel,
        out_shape=jax.ShapeDtypeStruct((OUTPUT_DIM, b_pad), jnp.float32),
        grid=(num_tiles,),
        in_specs=[
            pl.BlockSpec((INPUT_DIM, tile_b), lambda i: (0, i)),   # x tile (pipelined)
            const((HIDDEN_DIM, INPUT_DIM)),                        # w1 (resident)
            const((HIDDEN_DIM, 1)),                                # b1
            const((HIDDEN_DIM, HIDDEN_DIM)),                       # w2
            const((HIDDEN_DIM, 1)),                                # b2
            const((OUTPUT_DIM, HIDDEN_DIM)),                       # w3
            const((OUTPUT_DIM, 1)),                                # b3
        ],
        out_specs=pl.BlockSpec((OUTPUT_DIM, tile_b), lambda i: (0, i)),
        compiler_params=pltpu.CompilerParams(
            dimension_semantics=("parallel",)),
        cost_estimate=pl.CostEstimate(
            flops=flops, transcendentals=0, bytes_accessed=bytes_accessed),
    )(xt, w1t, b1c, w2t, b2c, w3t, b3c)

    # (OUTPUT_DIM, B_pad) -> (B, OUTPUT_DIM)
    return out_t[:, :B].T


def init_params(key):
    """Deterministic init mimicking PyTorch nn.Linear default:
    U(-1/sqrt(fan_in), 1/sqrt(fan_in)) for both weights and biases."""
    def linear_init(k, fan_in, fan_out):
        kw, kb = jax.random.split(k)
        bound = 1.0 / jnp.sqrt(jnp.float32(fan_in))
        w = jax.random.uniform(kw, (fan_in, fan_out), jnp.float32, -bound, bound)
        b = jax.random.uniform(kb, (1, fan_out), jnp.float32, -bound, bound)
        return w, b

    k1, k2, k3 = jax.random.split(key, 3)
    w1, b1 = linear_init(k1, INPUT_DIM, HIDDEN_DIM)
    w2, b2 = linear_init(k2, HIDDEN_DIM, HIDDEN_DIM)
    w3, b3 = linear_init(k3, HIDDEN_DIM, OUTPUT_DIM)
    return (w1, b1, w2, b2, w3, b3)


def reference_forward(x, params):
    w1, b1, w2, b2, w3, b3 = params
    h = jnp.maximum(x @ w1 + b1, 0.0)
    h = jnp.maximum(h @ w2 + b2, 0.0)
    return h @ w3 + b3


if __name__ == "__main__":
    key = jax.random.PRNGKey(0)
    kx, kp = jax.random.split(key)

    batch = 8
    x = jax.random.normal(kx, (batch, INPUT_DIM), jnp.float32)
    params = init_params(kp)

    out = polymer_nn_forward(x, params)
    out = jax.block_until_ready(out)

    # sanity check vs plain-JAX f32 reference (looser tolerance: bf16 MXU inputs)
    ref = reference_forward(x, params)
    assert out.shape == (batch, OUTPUT_DIM)
    assert jnp.allclose(out, ref, atol=5e-2, rtol=5e-2), (
        f"max abs err {jnp.max(jnp.abs(out - ref))}")

    print("KERNEL_OK")
</pallas_src>

<mosaic_0001>
module attributes {stable_mosaic.version = 11 : i64} {
  func.func @polymer_mlp_kernel(%arg0: i32, %arg1: memref<15x128xbf16, #tpu.memory_space<vmem>>, %arg2: memref<64x15xbf16, #tpu.memory_space<vmem>>, %arg3: memref<64x1xf32, #tpu.memory_space<vmem>>, %arg4: memref<64x64xbf16, #tpu.memory_space<vmem>>, %arg5: memref<64x1xf32, #tpu.memory_space<vmem>>, %arg6: memref<1x64xbf16, #tpu.memory_space<vmem>>, %arg7: memref<1x1xf32, #tpu.memory_space<vmem>>, %arg8: memref<1x128xf32, #tpu.memory_space<vmem>>) attributes {dimension_semantics = [#tpu.dimension_semantics<parallel>], iteration_bounds = array<i64: 1>, scalar_prefetch = 0 : i64, scratch_operands = 0 : i64, tpu.core_type = #tpu.core_type<tc>, window_params = [{transform_indices = @transform_0, window_bounds = array<i64: 15, 128>}, {pipeline_mode = #tpu.pipeline_mode<synchronous>, transform_indices = @transform_1, window_bounds = array<i64: 64, 15>}, {pipeline_mode = #tpu.pipeline_mode<synchronous>, transform_indices = @transform_2, window_bounds = array<i64: 64, 1>}, {pipeline_mode = #tpu.pipeline_mode<synchronous>, transform_indices = @transform_3, window_bounds = array<i64: 64, 64>}, {pipeline_mode = #tpu.pipeline_mode<synchronous>, transform_indices = @transform_4, window_bounds = array<i64: 64, 1>}, {pipeline_mode = #tpu.pipeline_mode<synchronous>, transform_indices = @transform_5, window_bounds = array<i64: 1, 64>}, {pipeline_mode = #tpu.pipeline_mode<synchronous>, transform_indices = @transform_6, window_bounds = array<i64: 1, 1>}, {transform_indices = @transform_7, window_bounds = array<i64: 1, 128>}]} {
    %c0 = arith.constant 0 : index
    %c0_0 = arith.constant 0 : index
    %0 = vector.load %arg2[%c0, %c0_0] : memref<64x15xbf16, #tpu.memory_space<vmem>>, vector<64x15xbf16>
    %c0_1 = arith.constant 0 : index
    %c0_2 = arith.constant 0 : index
    %1 = vector.load %arg1[%c0_1, %c0_2] : memref<15x128xbf16, #tpu.memory_space<vmem>>, vector<15x128xbf16>
    %cst = arith.constant dense<0.000000e+00> : vector<64x128xf32>
    %2 = tpu.matmul %0, %1, %cst {dimension_numbers = #tpu.dot_dimension_numbers<[1], [0], [0], [1], [0, 0, 1, 1], [], []>} : vector<64x15xbf16>, vector<15x128xbf16>, vector<64x128xf32> -> vector<64x128xf32>
    %c0_3 = arith.constant 0 : index
    %c0_4 = arith.constant 0 : index
    %3 = vector.load %arg3[%c0_3, %c0_4] : memref<64x1xf32, #tpu.memory_space<vmem>>, vector<64x1xf32>
    %4 = vector.broadcast %3 : vector<64x1xf32> to vector<64x128xf32>
    %5 = arith.addf %2, %4 : vector<64x128xf32>
    %cst_5 = arith.constant 0.000000e+00 : f32
    %6 = vector.broadcast %cst_5 : f32 to vector<64x128xf32>
    %7 = arith.maximumf %5, %6 : vector<64x128xf32>
    %c0_6 = arith.constant 0 : index
    %c0_7 = arith.constant 0 : index
    %8 = vector.load %arg4[%c0_6, %c0_7] : memref<64x64xbf16, #tpu.memory_space<vmem>>, vector<64x64xbf16>
    %9 = arith.truncf %7 : vector<64x128xf32> to vector<64x128xbf16>
    %cst_8 = arith.constant dense<0.000000e+00> : vector<64x128xf32>
    %10 = tpu.matmul %8, %9, %cst_8 {dimension_numbers = #tpu.dot_dimension_numbers<[1], [0], [0], [1], [0, 0, 1, 1], [], []>} : vector<64x64xbf16>, vector<64x128xbf16>, vector<64x128xf32> -> vector<64x128xf32>
    %c0_9 = arith.constant 0 : index
    %c0_10 = arith.constant 0 : index
    %11 = vector.load %arg5[%c0_9, %c0_10] : memref<64x1xf32, #tpu.memory_space<vmem>>, vector<64x1xf32>
    %12 = vector.broadcast %11 : vector<64x1xf32> to vector<64x128xf32>
    %13 = arith.addf %10, %12 : vector<64x128xf32>
    %cst_11 = arith.constant 0.000000e+00 : f32
    %14 = vector.broadcast %cst_11 : f32 to vector<64x128xf32>
    %15 = arith.maximumf %13, %14 : vector<64x128xf32>
    %c0_12 = arith.constant 0 : index
    %c0_13 = arith.constant 0 : index
    %16 = vector.load %arg6[%c0_12, %c0_13] : memref<1x64xbf16, #tpu.memory_space<vmem>>, vector<1x64xbf16>
    %17 = arith.truncf %15 : vector<64x128xf32> to vector<64x128xbf16>
    %cst_14 = arith.constant dense<0.000000e+00> : vector<1x128xf32>
    %18 = tpu.matmul %16, %17, %cst_14 {dimension_numbers = #tpu.dot_dimension_numbers<[1], [0], [0], [1], [0, 0, 1, 1], [], []>} : vector<1x64xbf16>, vector<64x128xbf16>, vector<1x128xf32> -> vector<1x128xf32>
    %c0_15 = arith.constant 0 : index
    %c0_16 = arith.constant 0 : index
    %19 = vector.load %arg7[%c0_15, %c0_16] : memref<1x1xf32, #tpu.memory_space<vmem>>, vector<1x1xf32>
    %20 = vector.broadcast %19 : vector<1x1xf32> to vector<1x128xf32>
    %21 = arith.addf %18, %20 : vector<1x128xf32>
    %c0_17 = arith.constant 0 : index
    %c0_18 = arith.constant 0 : index
    %22 = vector.load %arg8[%c0_17, %c0_18] : memref<1x128xf32, #tpu.memory_space<vmem>>, vector<1x128xf32>
    tpu.vector_store %arg8[%c0_17, %c0_18], %21 {strides = array<i32>} : memref<1x128xf32, #tpu.memory_space<vmem>>, vector<1x128xf32>,
    return
  }
  func.func @transform_0(%arg0: i32) -> (i32, i32) {
    %c0_i32 = arith.constant 0 : i32
    %c0_i32_0 = arith.constant 0 : i32
    return %c0_i32, %arg0 : i32, i32
  }
  func.func @transform_1(%arg0: i32) -> (i32, i32) {
    %c0_i32 = arith.constant 0 : i32
    %c0_i32_0 = arith.constant 0 : i32
    %c0_i32_1 = arith.constant 0 : i32
    return %c0_i32, %c0_i32_0 : i32, i32
  }
  func.func @transform_2(%arg0: i32) -> (i32, i32) {
    %c0_i32 = arith.constant 0 : i32
    %c0_i32_0 = arith.constant 0 : i32
    %c0_i32_1 = arith.constant 0 : i32
    return %c0_i32, %c0_i32_0 : i32, i32
  }
  func.func @transform_3(%arg0: i32) -> (i32, i32) {
    %c0_i32 = arith.constant 0 : i32
    %c0_i32_0 = arith.constant 0 : i32
    %c0_i32_1 = arith.constant 0 : i32
    return %c0_i32, %c0_i32_0 : i32, i32
  }
  func.func @transform_4(%arg0: i32) -> (i32, i32) {
    %c0_i32 = arith.constant 0 : i32
    %c0_i32_0 = arith.constant 0 : i32
    %c0_i32_1 = arith.constant 0 : i32
    return %c0_i32, %c0_i32_0 : i32, i32
  }
  func.func @transform_5(%arg0: i32) -> (i32, i32) {
    %c0_i32 = arith.constant 0 : i32
    %c0_i32_0 = arith.constant 0 : i32
    %c0_i32_1 = arith.constant 0 : i32
    return %c0_i32, %c0_i32_0 : i32, i32
  }
  func.func @transform_6(%arg0: i32) -> (i32, i32) {
    %c0_i32 = arith.constant 0 : i32
    %c0_i32_0 = arith.constant 0 : i32
    %c0_i32_1 = arith.constant 0 : i32
    return %c0_i32, %c0_i32_0 : i32, i32
  }
  func.func @transform_7(%arg0: i32) -> (i32, i32) {
    %c0_i32 = arith.constant 0 : i32
    %c0_i32_0 = arith.constant 0 : i32
    return %c0_i32, %arg0 : i32, i32
  }
}

</mosaic_0001>

<bundles_post_ra>
// kernel: tpu_custom_call.1
= control target key start
LH: loop header
LB: loop body
LE: loop exit
PB: predicated region body
PF: predicated region fallthrough
CT: control target
= control target key end

     0   :  { %s695_s0 = inlined_call_operand.vmem [shape: bf16[15,128], index: 0, kind: input, shape index: {}]   ;;  %s696_s1 = inlined_call_operand.vmem [shape: bf16[64,15], index: 1, kind: input, shape index: {}]   ;;  %s697_s2 = inlined_call_operand.vmem [shape: f32[64,1], index: 2, kind: input, shape index: {}]   ;;  %s698_s3 = inlined_call_operand.vmem [shape: bf16[64,64], index: 3, kind: input, shape index: {}]   ;;  %s699_s4 = inlined_call_operand.vmem [shape: f32[64,1], index: 4, kind: input, shape index: {}]   ;;  %s700_s5 = inlined_call_operand.vmem [shape: bf16[1,64], index: 5, kind: input, shape index: {}]   ;;  %s701_s6 = inlined_call_operand.<no memory space> [shape: f32[1,1], index: 6, kind: input, shape index: {}]   ;;  %s702_s7 = inlined_call_operand.hbm [shape: f32[1,128], index: 7, kind: output, shape index: {}]  }
   0x1   :  { %v12_v0 = vstv %s701_s6 }
   0x2   :  { %13 = vst [vmem:[#allocation2] sm:$0x1] %v12_v0 }
   0x3   :  { %v526_v1 = vld [vmem:[%s695_s0] sm:$0xff]   ;;  %vm126_vm0 = vcmask 1046528   ;;  %vm127_vm1 = vcmask 1047552   ;;  %v557_v2 = vmov 65535   ;;  %vm113_vm2 = vcmask 121856   ;;  %v46_v7 = vld [vmem:[%s697_s2 + $0x30] sm:$0xff] }
   0x4   :  { %v128_v3 = vsel %vm126_vm0, 4294967295, %v557_v2  ;;  %v527_v4 = vld [vmem:[%s696_s1] sm:$0xff]   ;;  %v528_v8 = vld [vmem:[%s696_s1 + $0x8] sm:$0xff]   ;;  %v558_v9 = vmov 0   ;;  %v529_v11 = vld [vmem:[%s696_s1 + $0x10] sm:$0xff]  }
   0x5   :  { %v129_v5 = vsel %vm127_vm1, %v128_v3, 0  ;;  %483 = vmatprep.mubr.msk.bf16.mxu0 %vm113_vm2, %v527_v4  ;;  %524 = vset.pattern.permute.xlu0 %v558_v9  ;;  %v44_v10 = vld [vmem:[%s697_s2 + $0x20] sm:$0xff]  ;;  %v47_v12 = vld [vmem:[%s697_s2 + $0x38] sm:$0xff]  ;;  %v42_v13 = vld [vmem:[%s697_s2 + $0x10] sm:$0xff] }
   0x6   :  { %v131_v6 = vand.u32 %v526_v1, %v129_v5  ;;  %80 = vperm.xlu0 %524, %v46_v7   ;;  %525 = vset.pattern.permute.xlu1 %v558_v9  ;;  %v45_v14 = vld [vmem:[%s697_s2 + $0x28] sm:$0xff] }
   0x7   :  { %70 = vperm.xlu1 %525, %v44_v10  }
   0x8   :  { %481 = vmatprep.subr.bf16.mxu0 %v131_v6 }
   0x9   :  { %482 = vmatpush3.bf16.msra.mxu0 %v131_v6 }
   0xa   :  { %85 = vperm.xlu0 %524, %v47_v12  }
   0xb   :  { %75 = vperm.xlu1 %525, %v45_v14  }
   0xc   :  { %484 = vmatmul.mubr.msk.bf16.vlgmr.msra.gmra.mxu0 %vm113_vm2, %v528_v8 }
   0xd   :  { %487 = vmatprep.mubr.msk.bf16.mxu0 %vm113_vm2, %v529_v11 }
   0xe   :  { %14 = vsyncpa [#allocation4], 0  ;;  %v530_v15 = vld [vmem:[%s696_s1 + $0x18] sm:$0xff]   ;;  %60 = vperm.xlu0 %524, %v42_v13   ;;  %v40_v17 = vld [vmem:[%s697_s2] sm:$0xff]  ;;  %vm286_vm3 = vcmask 523264   ;;  %v559_v4 = vmov 0.0  }
   0xf   :  { %v43_v16 = vld [vmem:[%s697_s2 + $0x18] sm:$0xff]  ;;  %v41_v18 = vld [vmem:[%s697_s2 + $0x8] sm:$0xff]  ;;  %v224_v19 = vld [vmem:[%s699_s4 + $0x30] sm:$0xff]  ;;  %507 = vmatprep.subr.bf16.mxu0 %v559_v4  ;;  %vm560_vm4 = vmmov 0   ;;  %s561_s24 = smov [#allocation3]  }
  0x10   :  { %65 = vperm.xlu1 %525, %v43_v16   ;;  %v225_v20 = vld [vmem:[%s699_s4 + $0x38] sm:$0xff]  ;;  %v222_v21 = vld [vmem:[%s699_s4 + $0x20] sm:$0xff]  ;;  %v223_v22 = vld [vmem:[%s699_s4 + $0x28] sm:$0xff]  ;;  %s437_s25 = sshll.u32 %s561_s24, 4  ;;  %s438_s25 = int_to_ptr.vmem [resolvable:$true] %s437_s25 }
  0x11   :  { %v220_v23 = vld [vmem:[%s699_s4 + $0x10] sm:$0xff]  ;;  %v221_v24 = vld [vmem:[%s699_s4 + $0x18] sm:$0xff]  ;;  %v218_v25 = vld [vmem:[%s699_s4] sm:$0xff]  ;;  %s535_s26 = scalar_lea.vmem %s438_s25, 16  ;;  %s539_s27 = scalar_lea.vmem %s438_s25, 32 }
  0x12   :  { %50 = vperm.xlu0 %524, %v40_v17   ;;  %v219_v26 = vld [vmem:[%s699_s4 + $0x8] sm:$0xff]  ;;  %v377_v27 = vld [vmem:[#allocation2] sm:$0x1]  ;;  %v533_v2 = vld [vmem:[%s698_s3 + $0x10] sm:$0xff]   ;;  %p536_p0 = scmp.ne.s32.totalorder %s438_s25, %s535_s26  ;;  %p540_p1 = scmp.lt.s32.totalorder %s438_s25, %s438_s25 }
  0x13   :  { %v531_v28 = vld [vmem:[%s698_s3] sm:$0xff]   ;;  %v532_v1 = vld [vmem:[%s698_s3 + $0x8] sm:$0xff]   ;;  %v534_v3 = vld [vmem:[%s698_s3 + $0x18] sm:$0xff]   ;;  %p541_p2 = scmp.lt.s32.totalorder %s539_s27, %s535_s26 }
  0x14   :  { %488 = vmatmul.mubr.msk.bf16.gmra.mxu0 %vm113_vm2, %v530_v15  ;;  %55 = vperm.xlu1 %525, %v41_v18  }
  0x15   :  { %499 = vmatprep.mubr.msk.bf16.mxu1 %vm286_vm3, %v531_v28  ;;  %515 = vmatprep.mubr.msk.bf16.mxu0 %vm560_vm4, %v559_v4  ;;  %p542_p3 = por %p541_p2, %p540_p1 }
  0x16   :  { %258 = vperm.xlu0 %524, %v224_v19  }
  0x17   :  { %p543_p4 = pnand %p542_p3, %p536_p0 }
  0x18   :  { %263 = vperm.xlu1 %525, %v225_v20  }
  0x1a   :  { %248 = vperm.xlu0 %524, %v222_v21  }
  0x1c   :  { %253 = vperm.xlu1 %525, %v223_v22  }
  0x1e   :  { %238 = vperm.xlu0 %524, %v220_v23  }
  0x20   :  { %243 = vperm.xlu1 %525, %v221_v24  }
  0x22   :  { %228 = vperm.xlu0 %524, %v218_v25  }
  0x24   :  { %233 = vperm.xlu1 %525, %v219_v26  }
  0x26   :  { %380 = vperm.xlu0 %524, %v377_v27  }
  0x81   :  { %v81_v31 = vpop.permute.xlu0 %80 }
  0x82   :  { %v71_v29 = vpop.permute.xlu1 %70 }
  0x85   :  { %v86_v36 = vpop.permute.xlu0 %85 }
  0x86   :  { %v76_v34 = vpop.permute.xlu1 %75 }
  0x89   :  { %v61_v44 = vpop.permute.xlu0 %60 }
  0x8b   :  { %v66_v40 = vpop.permute.xlu1 %65 }
  0x8d   :  { %v51_v58 = vpop.permute.xlu0 %50 }
  0x8f   :  { %v56_v54 = vpop.permute.xlu1 %55 }
  0x91   :  { %v259_v8 = vpop.permute.xlu0 %258 }
  0x93   :  { %v264_v6 = vpop.permute.xlu1 %263 }
  0x95   :  { %v249_v13 = vpop.permute.xlu0 %248 }
  0x97   :  { %v254_v11 = vpop.permute.xlu1 %253 }
  0x99   :  { %v239_v24 = vpop.permute.xlu0 %238 }
  0x9b   :  { %v244_v18 = vpop.permute.xlu1 %243 }
  0xcc   :  { %v485_v30 = vpop.f32.mrf.mxu0 }
  0xcd   :  { %v176_v50 = vadd.f32 %v485_v30, %v61_v44  ;;  %v234_v30 = vpop.permute.xlu1 %233 }
  0xce   :  { %v167_v32 = vpop.f32.mrf.mxu0 }
  0xcf   :  { %v200_v59 = vmax.f32 %v176_v50, 0.0  ;;  %v168_v60 = vadd.f32 %v167_v32, %v51_v58 }
  0xd0   :  { %v486_v33 = vpop.f32.mrf.mxu0 }
  0xd1   :  { %v179_v46 = vadd.f32 %v486_v33, %v66_v40  ;;  %v198_v63 = vmax.f32 %v168_v60, 0.0 }
  0xd2   :  { %v170_v35 = vpop.f32.mrf.mxu0 }
  0xd3   :  { %v201_v55 = vmax.f32 %v179_v46, 0.0  ;;  %v171_v56 = vadd.f32 %v170_v35, %v56_v54 }
  0xd4   :  { %v489_v37 = vpop.f32.mrf.mxu0 }
  0xd5   :  { %v192_v39 = vadd.f32 %v489_v37, %v81_v31  ;;  %v215_v61 = vpack.c.bf16 %v201_v55, %v200_v59  ;;  %v199_v62 = vmax.f32 %v171_v56, 0.0 }
  0xd6   :  { %v183_v38 = vpop.f32.mrf.mxu0 }
  0xd7   :  { %v184_v42 = vadd.f32 %v183_v38, %v71_v29  ;;  %v204_v47 = vmax.f32 %v192_v39, 0.0  ;;  %v214_v0 = vpack.c.bf16 %v199_v62, %v198_v63 }
  0xd8   :  { %v490_v41 = vpop.f32.mrf.mxu0 }
  0xd9   :  { %v195_v43 = vadd.f32 %v490_v41, %v86_v36  ;;  %v202_v51 = vmax.f32 %v184_v42, 0.0  ;;  %v372_v41 = vld [vmem:[%s700_s5] sm:$0x1]  ;;  %v383_v42 = vlaneseq }
  0xda   :  { %v186_v45 = vpop.f32.mrf.mxu0 }
  0xdb   :  { %v205_v48 = vmax.f32 %v195_v43, 0.0  ;;  %v187_v49 = vadd.f32 %v186_v45, %v76_v34  ;;  %v229_v34 = vpop.permute.xlu0 %228  ;;  %v384_v43 = vshrl.u32 %v383_v42, 7 }
  0xdd   :  { %v203_v52 = vmax.f32 %v187_v49, 0.0  ;;  %v217_v53 = vpack.c.bf16 %v205_v48, %v204_v47  ;;  %v385_v44 = vsub.s32 0, %v384_v43 }
  0xdf   :  { %v216_v57 = vpack.c.bf16 %v203_v52, %v202_v51  ;;  %491 = vmatprep.subr.bf16.mxu1 %v217_v53  ;;  %v381_v45 = vpop.permute.xlu0 %380 }
  0xe0   :  { %492 = vmatpush3.bf16.msra.mxu1 %v217_v53  ;;  %v386_v46 = vrot.slane %v381_v45, %v385_v44 }
  0xe1   :  { %493 = vmatprep.subr.bf16.mxu1 %v216_v57 }
  0xe4   :  { %494 = vmatpush3.bf16.msra.mxu1 %v216_v57 }
  0xe5   :  { %495 = vmatprep.subr.bf16.mxu1 %v215_v61 }
  0xe8   :  { %496 = vmatpush3.bf16.msra.mxu1 %v215_v61 }
  0xe9   :  { %497 = vmatprep.subr.bf16.mxu1 %v214_v0 }
  0xec   :  { %498 = vmatpush3.bf16.msra.mxu1 %v214_v0 }
  0xef   :  { %500 = vmatmul.mubr.msk.bf16.vlgmr.msra.gmra.mxu1 %vm286_vm3, %v532_v1 }
  0xf0   :  { %503 = vmatprep.mubr.msk.bf16.mxu1 %vm286_vm3, %v533_v2 }
  0xf7   :  { %504 = vmatmul.mubr.msk.bf16.gmra.mxu1 %vm286_vm3, %v534_v3 }
 0x1af   :  { %v501_v5 = vpop.f32.mrf.mxu1 }
 0x1b0   :  { %v342_v28 = vadd.f32 %v501_v5, %v239_v24 }
 0x1b1   :  { %v333_v7 = vpop.f32.mrf.mxu1 }
 0x1b2   :  { %v366_v35 = vmax.f32 %v342_v28, 0.0  ;;  %v334_v36 = vadd.f32 %v333_v7, %v229_v34 }
 0x1b3   :  { %v502_v9 = vpop.f32.mrf.mxu1 }
 0x1b4   :  { %v345_v25 = vadd.f32 %v502_v9, %v244_v18  ;;  %v364_v39 = vmax.f32 %v334_v36, 0.0 }
 0x1b5   :  { %v336_v10 = vpop.f32.mrf.mxu1 }
 0x1b6   :  { %v367_v31 = vmax.f32 %v345_v25, 0.0  ;;  %v337_v32 = vadd.f32 %v336_v10, %v234_v30 }
 0x1b7   :  { %v505_v12 = vpop.f32.mrf.mxu1 }
 0x1b8   :  { %v358_v15 = vadd.f32 %v505_v12, %v259_v8  ;;  %v374_v37 = vpack.c.bf16 %v367_v31, %v366_v35  ;;  %v365_v38 = vmax.f32 %v337_v32, 0.0 }
 0x1b9   :  { %v349_v14 = vpop.f32.mrf.mxu1 }
 0x1ba   :  { %v370_v20 = vmax.f32 %v358_v15, 0.0  ;;  %v350_v21 = vadd.f32 %v349_v14, %v249_v13  ;;  %v373_v40 = vpack.c.bf16 %v365_v38, %v364_v39 }
 0x1bb   :  { %v506_v16 = vpop.f32.mrf.mxu1 }
 0x1bc   :  { %v361_v17 = vadd.f32 %v506_v16, %v264_v6  ;;  %v368_v29 = vmax.f32 %v350_v21, 0.0 }
 0x1bd   :  { %v352_v19 = vpop.f32.mrf.mxu1 }
 0x1be   :  { %v371_v22 = vmax.f32 %v361_v17, 0.0  ;;  %v353_v23 = vadd.f32 %v352_v19, %v254_v11 }
 0x1c0   :  { %v376_v26 = vpack.c.bf16 %v371_v22, %v370_v20  ;;  %v369_v27 = vmax.f32 %v353_v23, 0.0 }
 0x1c2   :  { %508 = vmatpush3.bf16.msra.mxu0 %v376_v26  ;;  %v375_v33 = vpack.c.bf16 %v369_v27, %v368_v29 }
 0x1c3   :  { %509 = vmatprep.subr.bf16.mxu0 %v559_v4 }
 0x1c6   :  { %510 = vmatpush3.bf16.msra.mxu0 %v375_v33 }
 0x1c7   :  { %511 = vmatprep.subr.bf16.mxu0 %v559_v4 }
 0x1ca   :  { %512 = vmatpush3.bf16.msra.mxu0 %v374_v37 }
 0x1cb   :  { %513 = vmatprep.subr.bf16.mxu0 %v559_v4 }
 0x1ce   :  { %514 = vmatpush3.bf16.msra.mxu0 %v373_v40 }
 0x1d1   :  { %516 = vmatmul.mubr.msk.bf16.vlgmr.msra.gmra.mxu0 %vm286_vm3, %v372_v41 }
 0x291   :  { %v424_v47 = vpop.f32.mrf.mxu0 }
 0x292   :  { %v425_v48 = vadd.f32 %v424_v47, %v386_v46 }
 0x293   :  { %v517_v49 = vpop.f32.mrf.mxu0 }
 0x294   :  { %430 = vst [vmem:[#allocation3] sm:$0x1] %v425_v48 }
 0x295   :  { %v427_v50 = vpop.f32.mrf.mxu0 }
 0x296   :  { %546 = shalt.err (!%p543_p4)
}
 0x297   :  { %440 = dma.vmem_to_hbm [thread:$0]  %s438_s25, 16, %s702_s7, [#allocation4]   ;;  %v518_v51 = vpop.f32.mrf.mxu0 }
 0x298   :  { %555 = dma.done.wait [#allocation4], 16  }
 0x299   :  { %556 = vsyncadd [#allocation4], 4294967280 }
 0x29a   :  { %444 = vsyncpa [#allocation4], 1 }

</bundles_post_ra>
